<compile_context>
chip_gen: v7x
topology: tpu7x:2x2x1
jax: 0.10.0
libtpu: 0.0.40
codegen_flags: <defaults>
</compile_context>

<pallas_src>
import jax
import jax.numpy as jnp
import numpy as np
from jax.experimental import pallas as pl
from jax.experimental.pallas import tpu as pltpu


def rasa_kernel(m_ref, x_ref, o_ref):
    """o = x @ M for one row tile.  m_ref: (Dp, Dp); x_ref/o_ref: (tm, Dp)."""
    o_ref[...] = jnp.dot(
        x_ref[...], m_ref[...], preferred_element_type=jnp.float32
    ).astype(o_ref.dtype)


def _orthonormal_basis(weights, pos_out_dim):
    """Replicates the normalization / Gram-Schmidt of decompose_pos_{1D,2D}."""
    basis = []
    for w in weights:                              # w: (pos_out_dim, D)
        w = jnp.asarray(w, dtype=jnp.float32)
        if pos_out_dim == 1:
            # (x.v / v.v) v  ==  projection onto the normalized v.
            u = w[0] / jnp.linalg.norm(w[0])
            basis.append(u[None, :])
        else:
            u = w[0] / jnp.linalg.norm(w[0])
            v = w[1] / jnp.linalg.norm(w[1])
            v = v - jnp.dot(v, u) * u
            v = v / jnp.linalg.norm(v)
            basis.append(jnp.stack([u, v]))
    return basis                                   # list of (P, D)


def _removal_matrix(weights, pos_out_dim, D):
    """M s.t. x @ M == sequential projection removal over all layers."""
    M = jnp.eye(D, dtype=jnp.float32)
    I = jnp.eye(D, dtype=jnp.float32)
    for b in _orthonormal_basis(weights, pos_out_dim):   # rows orthonormal
        M = M @ (I - b.T @ b)
    return M                                       # (D, D) f32


def _row_tile(rows_eff, tile_m):
    """Row-tile size: large, multiple of 8, but keep >= ~8 grid steps."""
    if rows_eff <= 512:
        return rows_eff                            # single block == full dim
    t = min(tile_m, pl.cdiv(rows_eff, 8))
    return max(8, (t // 8) * 8)


def rasa_head_forward(x, pre_pos_weights, pos_pred_weight, *, pos_out_dim=2,
                      use_pos_pred=True, tile_m=2048):
    """Pallas implementation of RASAHead.forward(x) (return_pos_info=False)."""
    weights = list(pre_pos_weights)
    if use_pos_pred:
        weights = weights + [pos_pred_weight]
    assert len(weights) > 0

    B, N, D = x.shape
    rows = B * N

    # Fold all layers into one (D, D) matrix.  Tiny; fused under jit so it is
    # not a per-call dispatch cost in steady state.
    M = _removal_matrix(weights, pos_out_dim, D)

    # Row packing: k token rows per 128-wide lane row (no feature-dim zero pad).
    if D < 128 and 128 % D == 0:
        k = 128 // D
    else:
        k = 1
    Dp = k * D

    x2 = x.reshape(rows, D)
    pad_rows = (-rows) % k
    if pad_rows:
        # Only when B*N is not a multiple of k: append a handful of zero rows
        # so the packing reshape stays contiguous.
        x2 = jnp.concatenate(
            [x2, jnp.zeros((pad_rows, D), dtype=x2.dtype)], axis=0)
    rows_eff = (rows + pad_rows) // k
    x2 = x2.reshape(rows_eff, Dp)                  # free contiguous reshape

    if k > 1:
        M_res = jnp.kron(jnp.eye(k, dtype=jnp.float32), M)   # block-diagonal
    else:
        M_res = M
    M_res = M_res.astype(x.dtype)                  # single-dtype MXU path

    tm = _row_tile(rows_eff, tile_m)
    grid = pl.cdiv(rows_eff, tm)                   # ragged last block is fine

    x_itemsize = jnp.dtype(x.dtype).itemsize
    m_itemsize = jnp.dtype(M_res.dtype).itemsize

    out = pl.pallas_call(
        rasa_kernel,
        out_shape=jax.ShapeDtypeStruct((rows_eff, Dp), x.dtype),
        grid_spec=pltpu.PrefetchScalarGridSpec(
            num_scalar_prefetch=0,
            grid=(grid,),
            in_specs=[
                # Resident removal matrix: constant block index -> DMA'd once.
                # TODO(synk): pipeline_mode=pl.Buffered(1) would drop the
                # redundant second buffer (~Dp*Dp bytes); left at the default
                # for compatibility across jax versions (win is negligible).
                pl.BlockSpec((Dp, Dp), lambda i: (0, 0)),
                pl.BlockSpec((tm, Dp), lambda i: (i, 0)),   # token row tile
            ],
            out_specs=pl.BlockSpec((tm, Dp), lambda i: (i, 0)),
        ),
        compiler_params=pltpu.CompilerParams(
            dimension_semantics=("parallel",)),
        cost_estimate=pl.CostEstimate(
            flops=2 * rows_eff * Dp * Dp,
            transcendentals=0,
            bytes_accessed=2 * rows * D * x_itemsize + Dp * Dp * m_itemsize,
        ),
    )(M_res, x2)

    out = out.reshape(rows_eff * k, D)             # free unpack reshape
    if pad_rows:
        out = out[:rows]
    return out.reshape(B, N, D)


def rasa_head_reference(x, pre_pos_weights, pos_pred_weight, *, pos_out_dim=2,
                        use_pos_pred=True):
    """Pure-JAX reference mirroring the PyTorch forward exactly."""
    def decompose_2d(x, w):
        u = w[0] / jnp.linalg.norm(w[0])
        v = w[1] / jnp.linalg.norm(w[1])
        v = v - jnp.dot(v, u) * u
        v = v / jnp.linalg.norm(v)
        pu = jnp.sum(x * u, axis=-1, keepdims=True) * u
        pv = jnp.sum(x * v, axis=-1, keepdims=True) * v
        x_pos = pu + pv
        return x_pos, x - x_pos

    def decompose_1d(x, w):
        v = w[0]
        nom = jnp.einsum("bnd,d->bn", x, v)
        denom = jnp.dot(v, v)
        x_pos = v * (nom / denom)[..., None]
        return x_pos, x - x_pos

    dec = decompose_2d if pos_out_dim == 2 else decompose_1d
    for w in pre_pos_weights:
        _, x = dec(x, w)
    if use_pos_pred:
        _, x = dec(x, pos_pred_weight)
    return x


if __name__ == "__main__":
    # Small deterministic setup consistent with the module:
    #   input_dim D = 32, n_pos_layers = 2, pos_out_dim = 2, x: (2, 8, 32)
    B, N, D = 2, 8, 32
    n_pos_layers = 2

    key = jax.random.PRNGKey(0)
    kx, *kw = jax.random.split(key, 2 + n_pos_layers)
    x = jax.random.normal(kx, (B, N, D), dtype=jnp.float32)
    # nn.Linear(D, pos_out_dim, bias=False).weight has shape (pos_out_dim, D)
    pre_pos_weights = [
        jax.random.normal(kw[i], (2, D), dtype=jnp.float32) * 0.1
        for i in range(n_pos_layers)
    ]
    pos_pred_weight = (
        jax.random.normal(kw[n_pos_layers], (2, D), dtype=jnp.float32) * 0.1
    )

    # jit the whole forward so the tiny M-composition fuses with the kernel
    # (and is cached across calls with the same shapes).
    fwd = jax.jit(rasa_head_forward,
                  static_argnames=("pos_out_dim", "use_pos_pred", "tile_m"))

    y = jax.block_until_ready(
        fwd(x, pre_pos_weights, pos_pred_weight,
            pos_out_dim=2, use_pos_pred=True))
    y_ref = rasa_head_reference(x, pre_pos_weights, pos_pred_weight,
                                pos_out_dim=2, use_pos_pred=True)
    np.testing.assert_allclose(np.asarray(y), np.asarray(y_ref),
                               rtol=1e-4, atol=1e-4)

    # Also exercise the pos_out_dim == 1 branch (uses only row 0 of each weight).
    w1 = [w[:1] for w in pre_pos_weights]
    p1 = pos_pred_weight[:1]
    y1 = jax.block_until_ready(
        fwd(x, w1, p1, pos_out_dim=1, use_pos_pred=True))
    y1_ref = rasa_head_reference(x, w1, p1, pos_out_dim=1, use_pos_pred=True)
    np.testing.assert_allclose(np.asarray(y1), np.asarray(y1_ref),
                               rtol=1e-4, atol=1e-4)

    # TODO(synk): forward_pos_pred (Linear + sigmoid head) is not part of
    # forward(); it is trivial and omitted from the kernel.
    print("KERNEL_OK")
</pallas_src>

<mosaic_0001>
module attributes {stable_mosaic.version = 11 : i64} {
  func.func @rasa_kernel(%arg0: i32, %arg1: memref<128x128xf32, #tpu.memory_space<vmem>>, %arg2: memref<4x128xf32, #tpu.memory_space<vmem>>, %arg3: memref<4x128xf32, #tpu.memory_space<vmem>>) attributes {dimension_semantics = [#tpu.dimension_semantics<parallel>], iteration_bounds = array<i64: 1>, scalar_prefetch = 0 : i64, scratch_operands = 0 : i64, tpu.core_type = #tpu.core_type<tc>, window_params = [{pipeline_mode = #tpu.pipeline_mode<synchronous>, transform_indices = @transform_0, window_bounds = array<i64: 128, 128>}, {transform_indices = @transform_1, window_bounds = array<i64: 4, 128>}, {transform_indices = @transform_2, window_bounds = array<i64: 4, 128>}]} {
    %c0 = arith.constant 0 : index
    %c0_0 = arith.constant 0 : index
    %0 = vector.load %arg2[%c0, %c0_0] : memref<4x128xf32, #tpu.memory_space<vmem>>, vector<4x128xf32>
    %c0_1 = arith.constant 0 : index
    %c0_2 = arith.constant 0 : index
    %1 = vector.load %arg1[%c0_1, %c0_2] : memref<128x128xf32, #tpu.memory_space<vmem>>, vector<128x128xf32>
    %cst = arith.constant dense<0.000000e+00> : vector<4x128xf32>
    %2 = tpu.matmul %0, %1, %cst {dimension_numbers = #tpu.dot_dimension_numbers<[1], [0], [0], [1], [0, 0, 1, 1], [], []>} : vector<4x128xf32>, vector<128x128xf32>, vector<4x128xf32> -> vector<4x128xf32>
    %c0_3 = arith.constant 0 : index
    %c0_4 = arith.constant 0 : index
    %3 = vector.load %arg3[%c0_3, %c0_4] : memref<4x128xf32, #tpu.memory_space<vmem>>, vector<4x128xf32>
    tpu.vector_store %arg3[%c0_3, %c0_4], %2 {strides = array<i32>} : memref<4x128xf32, #tpu.memory_space<vmem>>, vector<4x128xf32>,
    return
  }
  func.func @transform_0(%arg0: i32) -> (i32, i32) {
    %c0_i32 = arith.constant 0 : i32
    %c0_i32_0 = arith.constant 0 : i32
    %c0_i32_1 = arith.constant 0 : i32
    return %c0_i32, %c0_i32_0 : i32, i32
  }
  func.func @transform_1(%arg0: i32) -> (i32, i32) {
    %c0_i32 = arith.constant 0 : i32
    %c0_i32_0 = arith.constant 0 : i32
    return %arg0, %c0_i32 : i32, i32
  }
  func.func @transform_2(%arg0: i32) -> (i32, i32) {
    %c0_i32 = arith.constant 0 : i32
    %c0_i32_0 = arith.constant 0 : i32
    return %arg0, %c0_i32 : i32, i32
  }
}

</mosaic_0001>

<bundles_post_ra>
// kernel: rasa_head_forward.1
= control target key start
LH: loop header
LB: loop body
LE: loop exit
PB: predicated region body
PF: predicated region fallthrough
CT: control target
= control target key end

     0   :  { %v182_v0 = vmov 0.0|0.0   ;;  %vm183_vm0 = vmmov 0   ;;  %v184_v4 = vmov 0.0   ;;  %s254_s0 = inlined_call_operand.vmem [shape: f32[128,128], index: 0, kind: input, shape index: {}]   ;;  %s255_s1 = inlined_call_operand.vmem [shape: f32[4,128], index: 1, kind: input, shape index: {}]   ;;  %s256_s2 = inlined_call_operand.vmem [shape: f32[4,128], index: 2, kind: output, shape index: {}]  }
   0x1   :  { %155 = vmatprep.subr.bf16.mxu0 %v182_v0  ;;  %v12_v1 = vld [vmem:[%s254_s0] sm:$0xff]  ;;  %v13_v2 = vld [vmem:[%s254_s0 + $0x8] sm:$0xff]  ;;  %v14_v3 = vld [vmem:[%s254_s0 + $0x10] sm:$0xff]  ;;  %152 = vmatprep.mubr.msk.f32.mxu0 %vm183_vm0, %v184_v4 }
   0x2   :  { %v156_v5 = vpack.c.bf16 %v13_v2, %v12_v1  ;;  %v15_v6 = vld [vmem:[%s254_s0 + $0x18] sm:$0xff]  ;;  %v16_v8 = vld [vmem:[%s254_s0 + $0x20] sm:$0xff]  ;;  %v17_v9 = vld [vmem:[%s254_s0 + $0x28] sm:$0xff] }
   0x3   :  { %v159_v7 = vpack.c.bf16 %v15_v6, %v14_v3  ;;  %v162_v10 = vpack.c.bf16 %v17_v9, %v16_v8  ;;  %v18_v11 = vld [vmem:[%s254_s0 + $0x30] sm:$0xff]  ;;  %v19_v12 = vld [vmem:[%s254_s0 + $0x38] sm:$0xff]  ;;  %v20_v14 = vld [vmem:[%s254_s0 + $0x40] sm:$0xff] }
   0x4   :  { %157 = vmatpush3.bf16.msra.mxu0 %v156_v5  ;;  %v165_v13 = vpack.c.bf16 %v19_v12, %v18_v11  ;;  %v21_v15 = vld [vmem:[%s254_s0 + $0x48] sm:$0xff]  ;;  %v22_v17 = vld [vmem:[%s254_s0 + $0x50] sm:$0xff]  ;;  %v23_v18 = vld [vmem:[%s254_s0 + $0x58] sm:$0xff] }
   0x5   :  { %158 = vmatprep.subr.bf16.mxu0 %v182_v0  ;;  %v168_v16 = vpack.c.bf16 %v21_v15, %v20_v14  ;;  %v171_v19 = vpack.c.bf16 %v23_v18, %v22_v17  ;;  %v24_v20 = vld [vmem:[%s254_s0 + $0x60] sm:$0xff]  ;;  %v25_v21 = vld [vmem:[%s254_s0 + $0x68] sm:$0xff]  ;;  %v26_v23 = vld [vmem:[%s254_s0 + $0x70] sm:$0xff] }
   0x6   :  { %v174_v22 = vpack.c.bf16 %v25_v21, %v24_v20  ;;  %v27_v24 = vld [vmem:[%s254_s0 + $0x78] sm:$0xff]  ;;  %v11_v26 = vld [vmem:[%s255_s1] sm:$0xf] }
   0x7   :  { %v177_v25 = vpack.c.bf16 %v27_v24, %v26_v23 }
   0x8   :  { %160 = vmatpush3.bf16.msra.mxu0 %v159_v7 }
   0x9   :  { %161 = vmatprep.subr.bf16.mxu0 %v182_v0 }
   0xc   :  { %163 = vmatpush3.bf16.msra.mxu0 %v162_v10 }
   0xd   :  { %164 = vmatprep.subr.bf16.mxu0 %v182_v0 }
  0x10   :  { %166 = vmatpush3.bf16.msra.mxu0 %v165_v13 }
  0x11   :  { %167 = vmatprep.subr.bf16.mxu0 %v182_v0 }
  0x14   :  { %169 = vmatpush3.bf16.msra.mxu0 %v168_v16 }
  0x15   :  { %170 = vmatprep.subr.bf16.mxu0 %v182_v0 }
  0x18   :  { %172 = vmatpush3.bf16.msra.mxu0 %v171_v19 }
  0x19   :  { %173 = vmatprep.subr.bf16.mxu0 %v182_v0 }
  0x1c   :  { %175 = vmatpush3.bf16.msra.mxu0 %v174_v22 }
  0x1d   :  { %176 = vmatprep.subr.bf16.mxu0 %v182_v0 }
  0x20   :  { %178 = vmatpush3.bf16.msra.mxu0 %v177_v25 }
  0x23   :  { %153 = vmatmul.mubr.f32.vlgmr.msra.gmra.mrb[0].mxu0 %v11_v26 }
  0xf6   :  { %v94_v27 = vpop.f32.mrb[0].mxu0 }
  0xf7   :  { %98 = vst [vmem:[%s256_s2] sm:$0xf] %v94_v27  ;;  %v154_v28 = vpop.f32.mrb[1].mxu0 }

</bundles_post_ra>
